<compile_context>
chip_gen: v7x
topology: tpu7x:2x2x1
jax: 0.10.0
libtpu: 0.0.40
codegen_flags: <defaults>
</compile_context>

<pallas_src>
import functools

import jax
import jax.numpy as jnp
import numpy as np
from jax.experimental import pallas as pl
from jax.experimental.pallas import tpu as pltpu


def _round_up(v, m):
    return ((v + m - 1) // m) * m


def _pad2(a, rows, cols):
    return jnp.pad(a, ((0, rows - a.shape[0]), (0, cols - a.shape[1])))


def _vmem_capacity_bytes():
    try:
        return int(pltpu.get_tpu_info().vmem_capacity_bytes)
    except Exception:
        return 64 * 2**20            # v7x-conservative fallback


def _host_array(a):
    """Concrete numpy view of `a`, or None when abstract (under jit/vmap)."""
    try:
        return np.asarray(a)
    except Exception:
        return None


def _precompute_xw(x, w):
    """xw = x @ W.T in f32 (tiny matmul), rounded once to bf16 for the kernel."""
    xw = jnp.dot(x.astype(jnp.float32), jnp.asarray(w, jnp.float32).T,
                 preferred_element_type=jnp.float32,
                 precision=jax.lax.Precision.HIGHEST)
    return xw.astype(jnp.bfloat16)


def _as_bf16(a):
    """int8/bf16 storage -> bf16 MXU operand (cast hidden under the adj DMA)."""
    if a.dtype == jnp.bfloat16:
        return a
    return a.astype(jnp.float32).astype(jnp.bfloat16)


# ---------------------------------------------------------------------------
# Single-shot kernel: whole problem resident in VMEM, one invocation.
# ---------------------------------------------------------------------------
def _gcn_single_kernel(a_ref, xw_ref, b_ref, o_ref):
    a = _as_bf16(a_ref[...])
    y = jnp.dot(a, xw_ref[...], preferred_element_type=jnp.float32)
    o_ref[...] = y + b_ref[...]


# ---------------------------------------------------------------------------
# Tiled kernel: grid = (row tiles i, scheduled nonzero adj blocks j per row).
#   kidx_ref[i*kmax + j] : column-block index of the j-th scheduled adj block of
#                          row tile i (padding repeats the last index -> no DMA)
#   nblk_ref[i]          : number of valid scheduled blocks for row tile i
# The f32 output block stays resident across j (index map constant in j) and is
# bias-initialized at j == 0 -> rows with no adjacency correctly produce `b`.
# ---------------------------------------------------------------------------
def _gcn_tiled_kernel(kidx_ref, nblk_ref, a_ref, xw_ref, b_ref, o_ref,
                      *, x_resident, kmax):
    i = pl.program_id(0)
    j = pl.program_id(1)

    @pl.when(j == 0)
    def _():
        o_ref[...] = jnp.zeros_like(o_ref) + b_ref[...]

    @pl.when(j < nblk_ref[i])        # skip compute on padded / empty blocks
    def _():
        a = _as_bf16(a_ref[...])
        if x_resident:
            tk = a_ref.shape[1]
            k = kidx_ref[i * kmax + j]
            xs = xw_ref[pl.ds(pl.multiple_of(k * tk, tk), tk), :]
        else:
            xs = xw_ref[...]
        o_ref[...] += jnp.dot(a, xs, preferred_element_type=jnp.float32)


def _block_schedule(adj_np, n, n_pm, n_pk, tm, tk):
    """Host-side block-sparsity schedule over (tm, tk) adjacency tiles."""
    gm, gk = n_pm // tm, n_pk // tk
    if adj_np is None:
        # TODO(synk): adj is abstract under jit -> dense all-blocks schedule
        # (correct, no sparsity skipping). Pass `schedule=` to keep the skipping.
        occ = np.ones((gm, gk), dtype=bool)
    else:
        ap = np.zeros((n_pm, n_pk), dtype=bool)
        ap[:n, :n] = adj_np != 0
        occ = ap.reshape(gm, tm, gk, tk).any(axis=(1, 3))
    nblk = occ.sum(axis=1).astype(np.int32)
    kmax = max(int(nblk.max()), 1)
    kidx = np.zeros((gm, kmax), dtype=np.int32)
    for r in range(gm):
        ks = np.flatnonzero(occ[r])
        if ks.size:
            kidx[r, :ks.size] = ks
            kidx[r, ks.size:] = ks[-1]    # repeated index -> Pallas skips re-DMA
    return kidx.reshape(-1), nblk, kmax   # kidx flat 1-D -> cheap SMEM padding


def gcn_layer(adj, x, w, b, *, tm=512, tk=512, single_shot=None,
              schedule=None, binary_adj=None):
    N, C_in = x.shape
    C_out = w.shape[0]
    assert adj.shape == (N, N)
    assert w.shape == (C_out, C_in) and b.shape == (C_out,)

    C_out_p = _round_up(C_out, 128)       # lane-dense output -> unmasked stores

    # ---- host-side adjacency analysis (binary? block-sparsity schedule) ----
    adj_np = _host_array(adj)
    if binary_adj is None:
        binary_adj = adj_np is not None and bool(
            np.all((adj_np == 0) | (adj_np == 1)))
    # int8 storage halves (vs bf16) the dominant adj HBM stream; the in-kernel
    # upcast feeds the MXU bf16 (weighted adjacency falls back to bf16 storage).
    adj_isz = 1 if binary_adj else 2
    adj_lp = adj.astype(jnp.int8 if binary_adj else jnp.bfloat16)

    # ---- tiny matmul reassociated out of the kernel ----
    xw = _precompute_xw(x, w)                                    # [N, C_out] bf16
    b2 = jnp.pad(jnp.asarray(b, jnp.float32),
                 (0, C_out_p - C_out)).reshape(1, C_out_p)

    vmem_cap = _vmem_capacity_bytes()
    # Headroom for Mosaic-internal scratch: ~52 MiB usable on v7x (64 MiB
    # physical), ~104 MiB on v5e/v6e (128 MiB physical).
    vmem_budget = max(min(vmem_cap - 12 * 2**20, 104 * 2**20), 32 * 2**20)

    if single_shot is None:
        tot = N * N * adj_isz + N * C_out_p * 2 + N * C_out_p * 4 + C_out_p * 4
        single_shot = tot <= min(vmem_budget // 2, 16 * 2**20)

    if single_shot:
        N_pr = _round_up(N, 32)      # int8 sublane packing (covers bf16/f32 too)
        N_pc = _round_up(N, 128)     # lane-dense adjacency last dim
        out = pl.pallas_call(
            _gcn_single_kernel,
            out_shape=jax.ShapeDtypeStruct((N_pr, C_out_p), jnp.float32),
        )(_pad2(adj_lp, N_pr, N_pc), _pad2(xw, N_pc, C_out_p), b2)
        return out[:N, :C_out]

    # ------------------------- tiled / block-sparse path -------------------------
    assert tm % 32 == 0 and tk % 128 == 0, "adj tile must be (32,128)-aligned"
    N_pm = _round_up(N, tm)
    N_pk = _round_up(N, tk)
    adj_p = _pad2(adj_lp, N_pm, N_pk)
    xw_p = _pad2(xw, N_pk, C_out_p)
    gm = N_pm // tm

    if schedule is None:
        schedule = _block_schedule(adj_np, N, N_pm, N_pk, tm, tk)
    kidx_np, nblk_np, kmax = schedule
    kidx = jnp.asarray(kidx_np, jnp.int32).reshape(-1)    # flat [gm * kmax]
    nblk = jnp.asarray(nblk_np, jnp.int32)

    # VMEM accounting: every BlockSpec input is double-buffered by default, even
    # with a constant index map, so count 2x for the resident xw / bias too.
    # TODO(synk): pipeline_mode=pl.Buffered(1) on the invariant xw/b blocks would
    # halve their footprint; kept off the critical path here for compile safety.
    base = (2 * tm * tk * adj_isz            # adj tile (double-buffered)
            + 2 * tm * C_out_p * 4           # output tile (double-buffered)
            + 2 * C_out_p * 4)               # bias
    xw_res_bytes = 2 * N_pk * C_out_p * 2
    x_resident = base + xw_res_bytes <= vmem_budget
    vmem_need = base + (xw_res_bytes if x_resident else 2 * tk * C_out_p * 2)
    assert vmem_need <= vmem_budget, "tile choice exceeds the per-chip VMEM budget"
    vmem_limit = int(min(vmem_cap - 8 * 2**20,
                         max(32 * 2**20, vmem_need * 5 // 4)))

    if x_resident:
        xw_spec = pl.BlockSpec((N_pk, C_out_p), lambda i, j, kidx, nblk: (0, 0))
    else:
        xw_spec = pl.BlockSpec(
            (tk, C_out_p), lambda i, j, kidx, nblk: (kidx[i * kmax + j], 0))

    kernel = functools.partial(_gcn_tiled_kernel,
                               x_resident=x_resident, kmax=kmax)

    out = pl.pallas_call(
        kernel,
        out_shape=jax.ShapeDtypeStruct((N_pm, C_out_p), jnp.float32),
        grid_spec=pltpu.PrefetchScalarGridSpec(
            num_scalar_prefetch=2,
            grid=(gm, kmax),
            in_specs=[
                pl.BlockSpec((tm, tk),
                             lambda i, j, kidx, nblk: (i, kidx[i * kmax + j])),
                xw_spec,
                pl.BlockSpec((1, C_out_p), lambda i, j, kidx, nblk: (0, 0)),
            ],
            out_specs=pl.BlockSpec((tm, C_out_p),
                                   lambda i, j, kidx, nblk: (i, 0)),
        ),
        compiler_params=pltpu.CompilerParams(
            dimension_semantics=("parallel", "arbitrary"),
            vmem_limit_bytes=vmem_limit,
        ),
    )(kidx, nblk, adj_p, xw_p, b2)
    return out[:N, :C_out]


if __name__ == "__main__":
    key = jax.random.PRNGKey(0)
    k_x1, k_a1, k_w, k_b, k_x2, k_a2 = jax.random.split(key, 6)

    C_in, C_out = 32, 64
    bound = 1.0 / (C_in ** 0.5)
    w = jax.random.uniform(k_w, (C_out, C_in), minval=-bound, maxval=bound,
                           dtype=jnp.float32)
    b = jax.random.uniform(k_b, (C_out,), minval=-bound, maxval=bound,
                           dtype=jnp.float32)
    w64 = np.asarray(w, np.float64)
    b64 = np.asarray(b, np.float64)

    def ref_full(adj, x):
        a = np.asarray(adj, np.float64)
        xx = np.asarray(x, np.float64)
        return (a @ xx) @ w64.T + b64

    def ref_kernel_quant(adj, x):
        # Same quantization point as the kernel: xw rounded once to bf16,
        # adjacency exact (binary -> int8 storage is lossless).
        xw = np.asarray(_precompute_xw(x, w).astype(jnp.float32), np.float64)
        return np.asarray(adj, np.float64) @ xw + b64

    # --- test 1: toy graph -> single-shot (no-grid) kernel path ---
    N1 = 256
    x1 = jax.random.normal(k_x1, (N1, C_in), dtype=jnp.float32)
    adj1 = (jax.random.uniform(k_a1, (N1, N1)) < 0.05).astype(jnp.float32)
    out1 = jax.block_until_ready(gcn_layer(adj1, x1, w, b))
    assert out1.shape == (N1, C_out)
    o1 = np.asarray(out1, np.float64)
    assert np.allclose(o1, ref_kernel_quant(adj1, x1), atol=2e-3, rtol=2e-3)
    assert np.allclose(o1, ref_full(adj1, x1), atol=1e-1, rtol=1e-1)

    # --- test 2: banded sparse graph -> tiled block-sparse kernel path ---
    N2 = 1024
    x2 = jax.random.normal(k_x2, (N2, C_in), dtype=jnp.float32)
    ii = jnp.arange(N2)
    band = jnp.abs(ii[:, None] - ii[None, :]) <= 200
    adj2 = ((jax.random.uniform(k_a2, (N2, N2)) < 0.05) & band).astype(jnp.float32)
    out2 = jax.block_until_ready(
        gcn_layer(adj2, x2, w, b, tm=256, tk=256, single_shot=False))
    assert out2.shape == (N2, C_out)
    o2 = np.asarray(out2, np.float64)
    assert np.allclose(o2, ref_kernel_quant(adj2, x2), atol=2e-3, rtol=2e-3)
    assert np.allclose(o2, ref_full(adj2, x2), atol=1e-1, rtol=1e-1)

    print("KERNEL_OK")
</pallas_src>

<mosaic_0001>
module attributes {stable_mosaic.version = 11 : i64} {
  func.func @_gcn_single_kernel(%arg0: memref<256x256xi8, #tpu.memory_space<vmem>>, %arg1: memref<256x128xbf16, #tpu.memory_space<vmem>>, %arg2: memref<1x128xf32, #tpu.memory_space<vmem>>, %arg3: memref<256x128xf32, #tpu.memory_space<vmem>>) attributes {dimension_semantics = [], scalar_prefetch = 0 : i64, scratch_operands = 0 : i64, tpu.core_type = #tpu.core_type<tc>} {
    %c0 = arith.constant 0 : index
    %c0_0 = arith.constant 0 : index
    %0 = vector.load %arg0[%c0, %c0_0] : memref<256x256xi8, #tpu.memory_space<vmem>>, vector<256x256xi8>
    %1 = arith.sitofp %0 : vector<256x256xi8> to vector<256x256xf32>
    %2 = arith.truncf %1 : vector<256x256xf32> to vector<256x256xbf16>
    %c0_1 = arith.constant 0 : index
    %c0_2 = arith.constant 0 : index
    %3 = vector.load %arg1[%c0_1, %c0_2] : memref<256x128xbf16, #tpu.memory_space<vmem>>, vector<256x128xbf16>
    %cst = arith.constant dense<0.000000e+00> : vector<256x128xf32>
    %4 = tpu.matmul %2, %3, %cst {dimension_numbers = #tpu.dot_dimension_numbers<[1], [0], [0], [1], [0, 0, 1, 1], [], []>} : vector<256x256xbf16>, vector<256x128xbf16>, vector<256x128xf32> -> vector<256x128xf32>
    %c0_3 = arith.constant 0 : index
    %c0_4 = arith.constant 0 : index
    %5 = vector.load %arg2[%c0_3, %c0_4] : memref<1x128xf32, #tpu.memory_space<vmem>>, vector<1x128xf32>
    %6 = vector.broadcast %5 : vector<1x128xf32> to vector<256x128xf32>
    %7 = arith.addf %4, %6 : vector<256x128xf32>
    %c0_5 = arith.constant 0 : index
    %c0_6 = arith.constant 0 : index
    %8 = vector.load %arg3[%c0_5, %c0_6] : memref<256x128xf32, #tpu.memory_space<vmem>>, vector<256x128xf32>
    tpu.vector_store %arg3[%c0_5, %c0_6], %7 {strides = array<i32>} : memref<256x128xf32, #tpu.memory_space<vmem>>, vector<256x128xf32>,
    return
  }
}

</mosaic_0001>

<bundles_post_ra>
// kernel: tpu_custom_call.1
= control target key start
LH: loop header
LB: loop body
LE: loop exit
PB: predicated region body
PF: predicated region fallthrough
CT: control target
= control target key end

     0   :  { %8 = vsyncpa [#allocation3], 0  ;;  %s782_s0 = inlined_call_operand.hbm [shape: s8[256,256], index: 0, kind: input, shape index: {}]   ;;  %s783_s1 = inlined_call_operand.hbm [shape: bf16[256,128], index: 1, kind: input, shape index: {}]   ;;  %s784_s2 = inlined_call_operand.vmem [shape: f32[1,128], index: 2, kind: input, shape index: {}]   ;;  %s785_s3 = inlined_call_operand.hbm [shape: f32[256,128], index: 3, kind: output, shape index: {}]  }
   0x1   :  { %9 = vsyncpa [#allocation6], 0 }
   0x2   :  { %10 = vsyncpa [#allocation4], 0  ;;  %s680_s12 = smov [#allocation2]   ;;  %s608_s16 = scalar_lea.hbm %s782_s0, 2048 }
   0x3   :  { %s16_s13 = sshll.u32 %s680_s12, 4  ;;  %p609_p0 = scmp.ne.s32.totalorder %s782_s0, %s608_s16  ;;  %s17_s13 = int_to_ptr.vmem [resolvable:$true] %s16_s13 }
   0x4   :  { %p612_p1 = scmp.lt.u32.totalorder %s608_s16, %s782_s0 }
   0x6   :  { %p614_p2 = pnand %p612_p1, %p609_p0 }
   0x8   :  { %617 = shalt.err (!%p614_p2)
}
   0x9   :  { %s618_s21 = scalar_lea.vmem %s17_s13, 2048  ;;  %p623_p4 = scmp.lt.s32.totalorder %s17_s13, %s17_s13 }
   0xa   :  { %p619_p3 = scmp.ne.s32.totalorder %s17_s13, %s618_s21  ;;  %p624_p5 = scmp.lt.s32.totalorder %s618_s21, %s618_s21 }
   0xc   :  { %p625_p6 = por %p624_p5, %p623_p4 }
   0xe   :  { %p626_p7 = pnand %p625_p6, %p619_p3 }
  0x10   :  { %629 = shalt.err (!%p626_p7)
}
  0x11   :  { %s681_s22 = smov 256   ;;  %s682_s23 = smov 16  }
  0x12   :  { %22 = dma.hbm_to_vmem [thread:$0]  %s782_s0, 2048, %s17_s13, [#allocation3], %s681_s22, %s681_s22, %s682_s23  }
  0x13   :  { %s683_s26 = smov [#allocation5]   ;;  %s630_s30 = scalar_lea.hbm %s783_s1, 2048 }
  0x14   :  { %s28_s27 = sshll.u32 %s683_s26, 4  ;;  %p631_p8 = scmp.ne.s32.totalorder %s783_s1, %s630_s30  ;;  %s29_s27 = int_to_ptr.vmem [resolvable:$true] %s28_s27 }
  0x15   :  { %p634_p9 = scmp.lt.u32.totalorder %s630_s30, %s783_s1 }
  0x17   :  { %p636_p10 = pnand %p634_p9, %p631_p8 }
  0x19   :  { %639 = shalt.err (!%p636_p10)
}
  0x1a   :  { %s640_s8 = scalar_lea.vmem %s29_s27, 2048  ;;  %p645_p12 = scmp.lt.s32.totalorder %s29_s27, %s29_s27 }
  0x1b   :  { %p641_p11 = scmp.ne.s32.totalorder %s29_s27, %s640_s8  ;;  %p646_p13 = scmp.lt.s32.totalorder %s640_s8, %s640_s8 }
  0x1d   :  { %p647_p0 = por %p646_p13, %p645_p12 }
  0x1f   :  { %p648_p1 = pnand %p647_p0, %p641_p11 }
  0x21   :  { %651 = shalt.err (!%p648_p1)
}
  0x22   :  { %s684_s0 = smov 64   ;;  %s685_s9 = smov 4  }
  0x23   :  { %34 = dma.hbm_to_vmem [thread:$0]  %s783_s1, 2048, %s29_s27, [#allocation6], %s684_s0, %s684_s0, %s685_s9  }
  0x24   :  { %674 = dma.done.wait [#allocation3], 2048  }
  0x25   :  { %675 = vsyncadd [#allocation3], 4294965248 }
  0x26   :  { %676 = dma.done.wait [#allocation6], 2048  }
  0x27   :  { %677 = vsyncadd [#allocation6], 4294965248  ;;  %v592_v0 = vld [vmem:[#allocation5 + $0x40] sm:$0xff]   ;;  %v594_v2 = vld [vmem:[#allocation5 + $0x48] sm:$0xff]  }
  0x28   :  { %v593_v1 = vld [vmem:[#allocation5] sm:$0xff]   ;;  %455 = vmatprep.subr.bf16.mxu0 %v592_v0  ;;  %567 = vmatprep.subr.bf16.mxu1 %v592_v0  ;;  %v595_v3 = vld [vmem:[#allocation5 + $0x8] sm:$0xff]   ;;  %v596_v4 = vld [vmem:[#allocation5 + $0x50] sm:$0xff]  }
  0x29   :  { %456 = vmatpush3.bf16.msra.mxu0 %v593_v1  ;;  %575 = vmatpush3.bf16.msra.mxu1 %v593_v1  ;;  %v597_v5 = vld [vmem:[#allocation5 + $0x10] sm:$0xff]   ;;  %v598_v6 = vld [vmem:[#allocation5 + $0x58] sm:$0xff]   ;;  %v600_v8 = vld [vmem:[#allocation5 + $0x60] sm:$0xff]  }
  0x2a   :  { %457 = vmatprep.subr.bf16.mxu0 %v594_v2  ;;  %568 = vmatprep.subr.bf16.mxu1 %v594_v2  ;;  %v599_v7 = vld [vmem:[#allocation5 + $0x18] sm:$0xff]   ;;  %v601_v9 = vld [vmem:[#allocation5 + $0x20] sm:$0xff]   ;;  %v602_v10 = vld [vmem:[#allocation5 + $0x68] sm:$0xff]  }
  0x2b   :  { %v45_v11 = vld [vmem:[#allocation2 + $0x8] sm:$0xff]  ;;  %v604_v16 = vld [vmem:[#allocation5 + $0x70] sm:$0xff]   ;;  %v606_v18 = vld [vmem:[#allocation5 + $0x78] sm:$0xff]  }
  0x2c   :  { %v53_v12 = vld [vmem:[#allocation2 + $0x48] sm:$0xff]  ;;  %v61_v13 = vunpack.c.l.s8.bf16 %v45_v11  ;;  %v605_v17 = vld [vmem:[#allocation5 + $0x30] sm:$0xff]   ;;  %v607_v19 = vld [vmem:[#allocation5 + $0x38] sm:$0xff]   ;;  %v63_v24 = vunpack.c.h.s8.bf16 %v45_v11 }
  0x2d   :  { %458 = vmatpush3.bf16.msra.mxu0 %v595_v3  ;;  %576 = vmatpush3.bf16.msra.mxu1 %v595_v3  ;;  %v77_v14 = vunpack.c.l.s8.bf16 %v53_v12  ;;  %v603_v15 = vld [vmem:[#allocation5 + $0x28] sm:$0xff]   ;;  %v44_v20 = vld [vmem:[#allocation2] sm:$0xff]  ;;  %v79_v25 = vunpack.c.h.s8.bf16 %v53_v12  ;;  %v47_v26 = vld [vmem:[#allocation2 + $0x18] sm:$0xff] }
  0x2e   :  { %459 = vmatprep.subr.bf16.mxu0 %v596_v4  ;;  %569 = vmatprep.subr.bf16.mxu1 %v596_v4  ;;  %v52_v21 = vld [vmem:[#allocation2 + $0x40] sm:$0xff]  ;;  %v60_v22 = vunpack.c.l.s8.bf16 %v44_v20  ;;  %v55_v27 = vld [vmem:[#allocation2 + $0x58] sm:$0xff]  ;;  %v62_v28 = vunpack.c.h.s8.bf16 %v44_v20  ;;  %v65_v30 = vunpack.c.l.s8.bf16 %v47_v26  ;;  %v46_v32 = vld [vmem:[#allocation2 + $0x10] sm:$0xff]  ;;  %v67_v36 = vunpack.c.h.s8.bf16 %v47_v26 }
  0x2f   :  { %259 = vmatprep.mubr.bf16.mxu0 %v61_v13  ;;  %323 = vmatprep.mubr.bf16.mxu1 %v77_v14  ;;  %v76_v23 = vunpack.c.l.s8.bf16 %v52_v21  ;;  %v78_v29 = vunpack.c.h.s8.bf16 %v52_v21  ;;  %v81_v31 = vunpack.c.l.s8.bf16 %v55_v27  ;;  %v54_v33 = vld [vmem:[#allocation2 + $0x50] sm:$0xff]  ;;  %v64_v34 = vunpack.c.l.s8.bf16 %v46_v32  ;;  %v49_v38 = vld [vmem:[#allocation2 + $0x28] sm:$0xff]  ;;  %v48_v44 = vld [vmem:[#allocation2 + $0x20] sm:$0xff] }
  0x30   :  { %v80_v35 = vunpack.c.l.s8.bf16 %v54_v33  ;;  %v83_v37 = vunpack.c.h.s8.bf16 %v55_v27  ;;  %v57_v39 = vld [vmem:[#allocation2 + $0x68] sm:$0xff]  ;;  %v66_v40 = vunpack.c.h.s8.bf16 %v46_v32  ;;  %v82_v41 = vunpack.c.h.s8.bf16 %v54_v33  ;;  %v56_v45 = vld [vmem:[#allocation2 + $0x60] sm:$0xff]  ;;  %v51_v50 = vld [vmem:[#allocation2 + $0x38] sm:$0xff] }
  0x31   :  { %460 = vmatpush3.bf16.msra.mxu0 %v597_v5  ;;  %577 = vmatpush3.bf16.msra.mxu1 %v597_v5  ;;  %v69_v42 = vunpack.c.l.s8.bf16 %v49_v38  ;;  %v85_v43 = vunpack.c.l.s8.bf16 %v57_v39  ;;  %v68_v46 = vunpack.c.l.s8.bf16 %v48_v44  ;;  %v84_v47 = vunpack.c.l.s8.bf16 %v56_v45  ;;  %v59_v51 = vld [vmem:[#allocation2 + $0x78] sm:$0xff]  ;;  %v50_v56 = vld [vmem:[#allocation2 + $0x30] sm:$0xff]  ;;  %v736_v2 = vld [vmem:[%s784_s2] ss:$0 sm:$0xff]  ;;  %s686_s2 = smov [#allocation7]  }
  0x32   :  { %461 = vmatprep.subr.bf16.mxu0 %v598_v6  ;;  %570 = vmatprep.subr.bf16.mxu1 %v598_v6  ;;  %v71_v48 = vunpack.c.h.s8.bf16 %v49_v38  ;;  %v87_v49 = vunpack.c.h.s8.bf16 %v57_v39  ;;  %v70_v52 = vunpack.c.h.s8.bf16 %v48_v44  ;;  %v86_v53 = vunpack.c.h.s8.bf16 %v56_v45  ;;  %v58_v57 = vld [vmem:[#allocation2 + $0x70] sm:$0xff]  ;;  %s425_s13 = sshll.u32 %s686_s2, 4  ;;  %s426_s13 = int_to_ptr.vmem [resolvable:$true] %s425_s13 }
  0x33   :  { %v73_v54 = vunpack.c.l.s8.bf16 %v51_v50  ;;  %v89_v55 = vunpack.c.l.s8.bf16 %v59_v51  ;;  %v72_v58 = vunpack.c.l.s8.bf16 %v50_v56  ;;  %v88_v59 = vunpack.c.l.s8.bf16 %v58_v57  ;;  %s652_s14 = scalar_lea.vmem %s426_s13, 4096  ;;  %p657_p3 = scmp.lt.s32.totalorder %s426_s13, %s426_s13 }
  0x34   :  { %v75_v60 = vunpack.c.h.s8.bf16 %v51_v50  ;;  %v91_v61 = vunpack.c.h.s8.bf16 %v59_v51  ;;  %v74_v62 = vunpack.c.h.s8.bf16 %v50_v56  ;;  %v90_v63 = vunpack.c.h.s8.bf16 %v58_v57  ;;  %p653_p2 = scmp.ne.s32.totalorder %s426_s13, %s652_s14  ;;  %p658_p4 = scmp.lt.s32.totalorder %s652_s14, %s652_s14 }
  0x35   :  { %462 = vmatpush3.bf16.msra.mxu0 %v599_v7  ;;  %578 = vmatpush3.bf16.msra.mxu1 %v599_v7 }
  0x36   :  { %463 = vmatprep.subr.bf16.mxu0 %v600_v8  ;;  %571 = vmatprep.subr.bf16.mxu1 %v600_v8  ;;  %p659_p5 = por %p658_p4, %p657_p3 }
  0x38   :  { %p660_p6 = pnand %p659_p5, %p653_p2 }
  0x39   :  { %464 = vmatpush3.bf16.msra.mxu0 %v601_v9  ;;  %579 = vmatpush3.bf16.msra.mxu1 %v601_v9 }
  0x3a   :  { %465 = vmatprep.subr.bf16.mxu0 %v602_v10  ;;  %572 = vmatprep.subr.bf16.mxu1 %v602_v10 }
  0x3d   :  { %466 = vmatpush3.bf16.msra.mxu0 %v603_v15  ;;  %580 = vmatpush3.bf16.msra.mxu1 %v603_v15 }
  0x3e   :  { %467 = vmatprep.subr.bf16.mxu0 %v604_v16  ;;  %573 = vmatprep.subr.bf16.mxu1 %v604_v16 }
  0x41   :  { %468 = vmatpush3.bf16.msra.mxu0 %v605_v17  ;;  %581 = vmatpush3.bf16.msra.mxu1 %v605_v17 }
  0x42   :  { %469 = vmatprep.subr.bf16.mxu0 %v606_v18  ;;  %574 = vmatprep.subr.bf16.mxu1 %v606_v18 }
  0x45   :  { %470 = vmatpush3.bf16.msra.mxu0 %v607_v19  ;;  %582 = vmatpush3.bf16.msra.mxu1 %v607_v19 }
  0x48   :  { %260 = vmatmul.mubr.bf16.vlgmr.msra.gmra.mrb[0].mxu0 %v60_v22  ;;  %324 = vmatmul.mubr.bf16.vlgmr.msra.gmra.mrb[0].mxu1 %v76_v23 }
  0x49   :  { %267 = vmatprep.mubr.bf16.mxu0 %v63_v24  ;;  %331 = vmatprep.mubr.bf16.mxu1 %v79_v25 }
  0x50   :  { %268 = vmatmul.mubr.bf16.gmra.mrb[4].mxu0 %v62_v28  ;;  %332 = vmatmul.mubr.bf16.gmra.mrb[4].mxu1 %v78_v29 }
  0x51   :  { %275 = vmatprep.mubr.bf16.mxu0 %v65_v30  ;;  %339 = vmatprep.mubr.bf16.mxu1 %v81_v31 }
  0x58   :  { %276 = vmatmul.mubr.bf16.gmra.mrb[8].mxu0 %v64_v34  ;;  %340 = vmatmul.mubr.bf16.gmra.mrb[8].mxu1 %v80_v35 }
  0x59   :  { %283 = vmatprep.mubr.bf16.mxu0 %v67_v36  ;;  %347 = vmatprep.mubr.bf16.mxu1 %v83_v37 }
  0x60   :  { %284 = vmatmul.mubr.bf16.gmra.mrb[12].mxu0 %v66_v40  ;;  %348 = vmatmul.mubr.bf16.gmra.mrb[12].mxu1 %v82_v41 }
  0x61   :  { %291 = vmatprep.mubr.bf16.mxu0 %v69_v42  ;;  %355 = vmatprep.mubr.bf16.mxu1 %v85_v43 }
  0x68   :  { %292 = vmatmul.mubr.bf16.gmra.mrb[16].mxu0 %v68_v46  ;;  %356 = vmatmul.mubr.bf16.gmra.mrb[16].mxu1 %v84_v47 }
  0x69   :  { %299 = vmatprep.mubr.bf16.mxu0 %v71_v48  ;;  %363 = vmatprep.mubr.bf16.mxu1 %v87_v49 }
  0x70   :  { %300 = vmatmul.mubr.bf16.gmra.mrb[20].mxu0 %v70_v52  ;;  %364 = vmatmul.mubr.bf16.gmra.mrb[20].mxu1 %v86_v53 }
  0x71   :  { %307 = vmatprep.mubr.bf16.mxu0 %v73_v54  ;;  %371 = vmatprep.mubr.bf16.mxu1 %v89_v55 }
  0x78   :  { %308 = vmatmul.mubr.bf16.gmra.mrb[24].mxu0 %v72_v58  ;;  %372 = vmatmul.mubr.bf16.gmra.mrb[24].mxu1 %v88_v59 }
  0x79   :  { %315 = vmatprep.mubr.bf16.mxu0 %v75_v60  ;;  %379 = vmatprep.mubr.bf16.mxu1 %v91_v61 }
  0x80   :  { %316 = vmatmul.mubr.bf16.gmra.mrb[28].mxu0 %v74_v62  ;;  %380 = vmatmul.mubr.bf16.gmra.mrb[28].mxu1 %v90_v63 }
 0x11b   :  { %v471_v0 = vpop.f32.mrb[0].mxu0  ;;  %v519_v1 = vpop.f32.mrb[0].mxu1 }
 0x11c   :  { %v472_v3 = vpop.f32.mrb[1].mxu0  ;;  %v520_v4 = vpop.f32.mrb[1].mxu1 }
 0x11d   :  { %v473_v5 = vadd.f32 %v472_v3, %v471_v0  ;;  %v521_v6 = vadd.f32 %v520_v4, %v519_v1  ;;  %v474_v7 = vpop.f32.mrb[2].mxu0  ;;  %v522_v8 = vpop.f32.mrb[2].mxu1 }
 0x11e   :  { %v475_v9 = vpop.f32.mrb[3].mxu0  ;;  %v523_v10 = vpop.f32.mrb[3].mxu1 }
 0x11f   :  { %v262_v11 = vadd.f32 %v473_v5, %v736_v2  ;;  %v326_v12 = vadd.f32 %v521_v6, %v736_v2  ;;  %v476_v13 = vadd.f32 %v475_v9, %v474_v7  ;;  %v524_v14 = vadd.f32 %v523_v10, %v522_v8 }
 0x121   :  { %388 = vst [vmem:[#allocation7] sm:$0xff] %v262_v11  ;;  %404 = vst [vmem:[#allocation7 + $0x80] sm:$0xff] %v326_v12  ;;  %v265_v15 = vadd.f32 %v476_v13, %v736_v2  ;;  %v329_v16 = vadd.f32 %v524_v14, %v736_v2 }
 0x123   :  { %389 = vst [vmem:[#allocation7 + $0x8] sm:$0xff] %v265_v15  ;;  %405 = vst [vmem:[#allocation7 + $0x88] sm:$0xff] %v329_v16  ;;  %v477_v17 = vpop.f32.mrb[4].mxu0  ;;  %v525_v18 = vpop.f32.mrb[4].mxu1 }
 0x124   :  { %v478_v19 = vpop.f32.mrb[5].mxu0  ;;  %v526_v20 = vpop.f32.mrb[5].mxu1 }
 0x125   :  { %v479_v21 = vadd.f32 %v478_v19, %v477_v17  ;;  %v527_v22 = vadd.f32 %v526_v20, %v525_v18  ;;  %v480_v23 = vpop.f32.mrb[6].mxu0  ;;  %v528_v24 = vpop.f32.mrb[6].mxu1 }
 0x126   :  { %v481_v25 = vpop.f32.mrb[7].mxu0  ;;  %v529_v26 = vpop.f32.mrb[7].mxu1 }
 0x127   :  { %v270_v27 = vadd.f32 %v479_v21, %v736_v2  ;;  %v334_v28 = vadd.f32 %v527_v22, %v736_v2  ;;  %v482_v29 = vadd.f32 %v481_v25, %v480_v23  ;;  %v530_v30 = vadd.f32 %v529_v26, %v528_v24 }
 0x129   :  { %390 = vst [vmem:[#allocation7 + $0x10] sm:$0xff] %v270_v27  ;;  %406 = vst [vmem:[#allocation7 + $0x90] sm:$0xff] %v334_v28  ;;  %v273_v31 = vadd.f32 %v482_v29, %v736_v2  ;;  %v337_v32 = vadd.f32 %v530_v30, %v736_v2 }
 0x12b   :  { %391 = vst [vmem:[#allocation7 + $0x18] sm:$0xff] %v273_v31  ;;  %407 = vst [vmem:[#allocation7 + $0x98] sm:$0xff] %v337_v32  ;;  %v483_v33 = vpop.f32.mrb[8].mxu0  ;;  %v531_v34 = vpop.f32.mrb[8].mxu1 }
 0x12c   :  { %v484_v35 = vpop.f32.mrb[9].mxu0  ;;  %v532_v36 = vpop.f32.mrb[9].mxu1 }
 0x12d   :  { %v485_v37 = vadd.f32 %v484_v35, %v483_v33  ;;  %v533_v38 = vadd.f32 %v532_v36, %v531_v34  ;;  %v486_v39 = vpop.f32.mrb[10].mxu0  ;;  %v534_v40 = vpop.f32.mrb[10].mxu1 }
 0x12e   :  { %v487_v41 = vpop.f32.mrb[11].mxu0  ;;  %v535_v42 = vpop.f32.mrb[11].mxu1 }
 0x12f   :  { %v278_v43 = vadd.f32 %v485_v37, %v736_v2  ;;  %v342_v44 = vadd.f32 %v533_v38, %v736_v2  ;;  %v488_v45 = vadd.f32 %v487_v41, %v486_v39  ;;  %v536_v46 = vadd.f32 %v535_v42, %v534_v40 }
 0x131   :  { %392 = vst [vmem:[#allocation7 + $0x20] sm:$0xff] %v278_v43  ;;  %408 = vst [vmem:[#allocation7 + $0xa0] sm:$0xff] %v342_v44  ;;  %v281_v47 = vadd.f32 %v488_v45, %v736_v2  ;;  %v345_v48 = vadd.f32 %v536_v46, %v736_v2 }
 0x133   :  { %393 = vst [vmem:[#allocation7 + $0x28] sm:$0xff] %v281_v47  ;;  %409 = vst [vmem:[#allocation7 + $0xa8] sm:$0xff] %v345_v48  ;;  %v489_v49 = vpop.f32.mrb[12].mxu0  ;;  %v537_v50 = vpop.f32.mrb[12].mxu1 }
 0x134   :  { %v490_v51 = vpop.f32.mrb[13].mxu0  ;;  %v538_v52 = vpop.f32.mrb[13].mxu1 }
 0x135   :  { %v491_v53 = vadd.f32 %v490_v51, %v489_v49  ;;  %v539_v54 = vadd.f32 %v538_v52, %v537_v50  ;;  %v492_v55 = vpop.f32.mrb[14].mxu0  ;;  %v540_v56 = vpop.f32.mrb[14].mxu1 }
 0x136   :  { %v493_v57 = vpop.f32.mrb[15].mxu0  ;;  %v541_v58 = vpop.f32.mrb[15].mxu1 }
 0x137   :  { %v286_v59 = vadd.f32 %v491_v53, %v736_v2  ;;  %v350_v60 = vadd.f32 %v539_v54, %v736_v2  ;;  %v494_v61 = vadd.f32 %v493_v57, %v492_v55  ;;  %v542_v62 = vadd.f32 %v541_v58, %v540_v56 }
 0x139   :  { %394 = vst [vmem:[#allocation7 + $0x30] sm:$0xff] %v286_v59  ;;  %410 = vst [vmem:[#allocation7 + $0xb0] sm:$0xff] %v350_v60  ;;  %v289_v63 = vadd.f32 %v494_v61, %v736_v2  ;;  %v353_v0 = vadd.f32 %v542_v62, %v736_v2 }
 0x13b   :  { %395 = vst [vmem:[#allocation7 + $0x38] sm:$0xff] %v289_v63  ;;  %411 = vst [vmem:[#allocation7 + $0xb8] sm:$0xff] %v353_v0  ;;  %v495_v1 = vpop.f32.mrb[16].mxu0  ;;  %v543_v3 = vpop.f32.mrb[16].mxu1 }
 0x13c   :  { %v496_v4 = vpop.f32.mrb[17].mxu0  ;;  %v544_v5 = vpop.f32.mrb[17].mxu1 }
 0x13d   :  { %v497_v6 = vadd.f32 %v496_v4, %v495_v1  ;;  %v545_v7 = vadd.f32 %v544_v5, %v543_v3  ;;  %v498_v8 = vpop.f32.mrb[18].mxu0  ;;  %v546_v9 = vpop.f32.mrb[18].mxu1 }
 0x13e   :  { %v499_v10 = vpop.f32.mrb[19].mxu0  ;;  %v547_v11 = vpop.f32.mrb[19].mxu1 }
 0x13f   :  { %v294_v12 = vadd.f32 %v497_v6, %v736_v2  ;;  %v358_v13 = vadd.f32 %v545_v7, %v736_v2  ;;  %v500_v14 = vadd.f32 %v499_v10, %v498_v8  ;;  %v548_v15 = vadd.f32 %v547_v11, %v546_v9 }
 0x141   :  { %396 = vst [vmem:[#allocation7 + $0x40] sm:$0xff] %v294_v12  ;;  %412 = vst [vmem:[#allocation7 + $0xc0] sm:$0xff] %v358_v13  ;;  %v297_v16 = vadd.f32 %v500_v14, %v736_v2  ;;  %v361_v17 = vadd.f32 %v548_v15, %v736_v2 }
 0x143   :  { %397 = vst [vmem:[#allocation7 + $0x48] sm:$0xff] %v297_v16  ;;  %413 = vst [vmem:[#allocation7 + $0xc8] sm:$0xff] %v361_v17  ;;  %v501_v18 = vpop.f32.mrb[20].mxu0  ;;  %v549_v19 = vpop.f32.mrb[20].mxu1 }
 0x144   :  { %v502_v20 = vpop.f32.mrb[21].mxu0  ;;  %v550_v21 = vpop.f32.mrb[21].mxu1 }
 0x145   :  { %v503_v22 = vadd.f32 %v502_v20, %v501_v18  ;;  %v551_v23 = vadd.f32 %v550_v21, %v549_v19  ;;  %v504_v24 = vpop.f32.mrb[22].mxu0  ;;  %v552_v25 = vpop.f32.mrb[22].mxu1 }
 0x146   :  { %v505_v26 = vpop.f32.mrb[23].mxu0  ;;  %v553_v27 = vpop.f32.mrb[23].mxu1 }
 0x147   :  { %v302_v28 = vadd.f32 %v503_v22, %v736_v2  ;;  %v366_v29 = vadd.f32 %v551_v23, %v736_v2  ;;  %v506_v30 = vadd.f32 %v505_v26, %v504_v24  ;;  %v554_v31 = vadd.f32 %v553_v27, %v552_v25 }
 0x149   :  { %398 = vst [vmem:[#allocation7 + $0x50] sm:$0xff] %v302_v28  ;;  %414 = vst [vmem:[#allocation7 + $0xd0] sm:$0xff] %v366_v29  ;;  %v305_v32 = vadd.f32 %v506_v30, %v736_v2  ;;  %v369_v33 = vadd.f32 %v554_v31, %v736_v2 }
 0x14b   :  { %399 = vst [vmem:[#allocation7 + $0x58] sm:$0xff] %v305_v32  ;;  %415 = vst [vmem:[#allocation7 + $0xd8] sm:$0xff] %v369_v33  ;;  %v507_v34 = vpop.f32.mrb[24].mxu0  ;;  %v555_v35 = vpop.f32.mrb[24].mxu1 }
 0x14c   :  { %v508_v36 = vpop.f32.mrb[25].mxu0  ;;  %v556_v37 = vpop.f32.mrb[25].mxu1 }
 0x14d   :  { %v509_v38 = vadd.f32 %v508_v36, %v507_v34  ;;  %v557_v39 = vadd.f32 %v556_v37, %v555_v35  ;;  %v510_v40 = vpop.f32.mrb[26].mxu0  ;;  %v558_v41 = vpop.f32.mrb[26].mxu1 }
 0x14e   :  { %v511_v42 = vpop.f32.mrb[27].mxu0  ;;  %v559_v43 = vpop.f32.mrb[27].mxu1 }
 0x14f   :  { %v310_v44 = vadd.f32 %v509_v38, %v736_v2  ;;  %v374_v45 = vadd.f32 %v557_v39, %v736_v2  ;;  %v512_v46 = vadd.f32 %v511_v42, %v510_v40  ;;  %v560_v47 = vadd.f32 %v559_v43, %v558_v41 }
 0x151   :  { %400 = vst [vmem:[#allocation7 + $0x60] sm:$0xff] %v310_v44  ;;  %416 = vst [vmem:[#allocation7 + $0xe0] sm:$0xff] %v374_v45  ;;  %v313_v48 = vadd.f32 %v512_v46, %v736_v2  ;;  %v377_v49 = vadd.f32 %v560_v47, %v736_v2 }
 0x153   :  { %401 = vst [vmem:[#allocation7 + $0x68] sm:$0xff] %v313_v48  ;;  %417 = vst [vmem:[#allocation7 + $0xe8] sm:$0xff] %v377_v49  ;;  %v513_v50 = vpop.f32.mrb[28].mxu0  ;;  %v561_v51 = vpop.f32.mrb[28].mxu1 }
 0x154   :  { %v514_v52 = vpop.f32.mrb[29].mxu0  ;;  %v562_v53 = vpop.f32.mrb[29].mxu1 }
 0x155   :  { %v515_v54 = vadd.f32 %v514_v52, %v513_v50  ;;  %v563_v55 = vadd.f32 %v562_v53, %v561_v51  ;;  %v516_v56 = vpop.f32.mrb[30].mxu0  ;;  %v564_v57 = vpop.f32.mrb[30].mxu1 }
 0x156   :  { %v517_v58 = vpop.f32.mrb[31].mxu0  ;;  %v565_v59 = vpop.f32.mrb[31].mxu1 }
 0x157   :  { %v318_v60 = vadd.f32 %v515_v54, %v736_v2  ;;  %v382_v61 = vadd.f32 %v563_v55, %v736_v2  ;;  %v518_v62 = vadd.f32 %v517_v58, %v516_v56  ;;  %v566_v63 = vadd.f32 %v565_v59, %v564_v57 }
 0x159   :  { %402 = vst [vmem:[#allocation7 + $0x70] sm:$0xff] %v318_v60  ;;  %418 = vst [vmem:[#allocation7 + $0xf0] sm:$0xff] %v382_v61  ;;  %v321_v0 = vadd.f32 %v518_v62, %v736_v2  ;;  %v385_v1 = vadd.f32 %v566_v63, %v736_v2 }
 0x15b   :  { %403 = vst [vmem:[#allocation7 + $0x78] sm:$0xff] %v321_v0  ;;  %419 = vst [vmem:[#allocation7 + $0xf8] sm:$0xff] %v385_v1 }
 0x15c   :  { %663 = shalt.err (!%p660_p6)
}
 0x15d   :  { %s664_s17 = scalar_lea.hbm %s785_s3, 4096 }
 0x15e   :  { %p665_p7 = scmp.ne.s32.totalorder %s785_s3, %s664_s17  ;;  %p668_p8 = scmp.lt.u32.totalorder %s664_s17, %s785_s3 }
 0x160   :  { %p670_p9 = pnand %p668_p8, %p665_p7 }
 0x162   :  { %673 = shalt.err (!%p670_p9)
}
 0x163   :  { %s687_s22 = smov 128   ;;  %s688_s23 = smov 8  }
 0x164   :  { %431 = dma.vmem_to_hbm [thread:$0]  %s426_s13, 4096, %s785_s3, [#allocation4], %s687_s22, %s687_s22, %s688_s23  }
 0x165   :  { %678 = dma.done.wait [#allocation4], 4096  }
 0x166   :  { %679 = vsyncadd [#allocation4], 4294963200 }
 0x167   :  { %435 = vsyncpa [#allocation3], 1 }
 0x168   :  { %436 = vsyncpa [#allocation6], 1 }
 0x169   :  { %437 = vsyncpa [#allocation4], 1 }

</bundles_post_ra>
